<compile_context>
chip_gen: v6e
topology: v6e:2x2x1
jax: 0.10.0
libtpu: 0.0.40
codegen_flags: <defaults>
</compile_context>

<pallas_src>
import functools

import jax
import jax.numpy as jnp
from jax import lax
from jax.experimental import pallas as pl
from jax.experimental.pallas import tpu as pltpu

EPSILON = 1e-5

# Contract over the last dim of BOTH operands (q @ k^T pattern): the result
# comes out directly in the lane-dense (statistic, heatmap-index) layout.
_TRANS_B_DIMS = (((1,), (1,)), ((), ()))


def _round_up(x, m):
    return ((x + m - 1) // m) * m


def _cdiv(a, b):
    return -(-a // b)


def _pca_kernel(hm_ref, basis_ref, out_ref):
    # hm_ref    : (rt, HW)  raw heatmaps, caller dtype (one heatmap per row)
    # basis_ref : (8, HW)   f32 rows [1, x, y, x^2, x*y, y^2, 0, 0]
    # out_ref   : (8, rt)   f32 rows [xmean, ymean, cxx, cxy, cyx, cyy, 0, 0]
    #
    # TODO(synk): for bf16/fp16 callers the f32 upcast is still materialized
    # here (mixed-dtype MXU operands are not a portable Mosaic lowering); the
    # upcast at least happens post-DMA so HBM traffic stays at the narrow
    # dtype.  For the f32 demo below it is a no-op.
    p = hm_ref[...].astype(jnp.float32)                                 # (rt, HW)

    # Six raw moments of p in ONE MXU matmul, already lane-dense:
    # rows = [S0, Sx, Sy, Sxx, Sxy, Syy, 0, 0].
    mom = lax.dot_general(basis_ref[...], p, _TRANS_B_DIMS,
                          preferred_element_type=jnp.float32)           # (8, rt)
    # sum(p^2) also via the MXU (row 0 of the basis is the all-ones row),
    # keeping the XLU free of lane-axis tree reductions.
    p2 = lax.dot_general(basis_ref[...], p * p, _TRANS_B_DIMS,
                         preferred_element_type=jnp.float32)[0:1, :]    # (1, rt)

    s0 = mom[0:1, :]
    sx = mom[1:2, :]
    sy = mom[2:3, :]
    sxx = mom[3:4, :]
    sxy = mom[4:5, :]
    syy = mom[5:6, :]

    # heatmap_sum = clamp(sum, min=1e-6); the division by s is deferred to the
    # per-heatmap scalars below (htp = p / s is never materialized).
    s = jnp.maximum(s0, 1e-6)
    inv_s = 1.0 / s

    xmean = sx * inv_s
    ymean = sy * inv_s

    # Unbiased weighted covariance via the raw-moment expansion:
    #   sum(htp*(c-mc)*(d-md)) = (S_cd - mc*S_d - md*S_c + mc*md*S_0) / s
    cxx = (sxx - 2.0 * xmean * sx + xmean * xmean * s0) * inv_s
    cxy = (sxy - xmean * sy - ymean * sx + xmean * ymean * s0) * inv_s
    cyy = (syy - 2.0 * ymean * sy + ymean * ymean * s0) * inv_s

    v1 = s0 * inv_s + EPSILON               # sum(htp)   + eps
    v2 = p2 * inv_s * inv_s + EPSILON       # sum(htp^2) + eps
    inv_denom = 1.0 / (v1 - v2 / v1)

    zeros = jnp.zeros_like(xmean)
    # Single lane-dense (8, rt) store (rt is a multiple of 128 -> unmasked vst).
    out_ref[...] = jnp.concatenate(
        [xmean, ymean,
         cxx * inv_denom, cxy * inv_denom, cxy * inv_denom, cyy * inv_denom,
         zeros, zeros], axis=0)


def _make_grid(h, w):
    # Matches torch.meshgrid(arange(h)/(h-1)*2-1, arange(w)/(w-1)*2-1) ('ij').
    # Note: H==1 or W==1 produces inf coords, same as the PyTorch reference.
    yy = (jnp.arange(h, dtype=jnp.float32) / (h - 1)) * 2.0 - 1.0
    xx = (jnp.arange(w, dtype=jnp.float32) / (w - 1)) * 2.0 - 1.0
    yv = jnp.broadcast_to(yy[:, None], (h, w))
    xv = jnp.broadcast_to(xx[None, :], (h, w))
    return yv, xv


def _vmem_capacity_bytes():
    try:
        return int(pltpu.get_tpu_info().vmem_capacity_bytes)
    except Exception:
        return 64 << 20    # conservative fallback (v7x per-TensorCore VMEM)


@functools.partial(jax.jit, static_argnames=("row_tile",))
def testtime_pca_core(heatmap, row_tile=4096):
    """heatmap: (B, N, H, W) -> (means (B,N,2), covars (B,N,2,2),
    evalues (B,N,2), evectors (B,N,2,2))."""
    b, n, h, w = heatmap.shape
    bn, hw = b * n, h * w
    itemsize = jnp.dtype(heatmap.dtype).itemsize

    # ---- static tiling decisions (shapes are concrete at trace time) ----
    vmem_cap = _vmem_capacity_bytes()
    # Per-row live VMEM: 2 pipelined input buffers (caller dtype) + the f32
    # upcast + the p*p temporary inside the kernel.  Basis/output are tiny.
    per_row_bytes = hw * (2 * itemsize + 8)
    budget = max(1 << 20, int(vmem_cap * 0.45))
    budget_rows = max(128, (budget // per_row_bytes) // 128 * 128)
    rt_cap = max(128, min(int(row_tile), budget_rows))
    num_steps = max(1, _cdiv(bn, rt_cap))
    # v7x has two TensorCores: give the single "parallel" grid axis >= 2 steps
    # whenever there are at least two 128-row tiles of real work.
    if bn > 128 and num_steps < 2:
        num_steps = 2
    rt = _round_up(_cdiv(bn, num_steps), 128)   # lane-dense out + packing-safe
    bn_pad = rt * num_steps

    # Keep the caller dtype through the DMA; pad rows instead of asserting
    # divisibility (padded rows compute finite garbage and are sliced off).
    hm2d = heatmap.reshape(bn, hw)
    if bn_pad != bn:
        hm2d = jnp.pad(hm2d, ((0, bn_pad - bn), (0, 0)))

    yv, xv = _make_grid(h, w)
    x = xv.reshape(hw)
    y = yv.reshape(hw)
    one = jnp.ones((hw,), jnp.float32)
    zero = jnp.zeros((hw,), jnp.float32)
    # Transposed basis (8, hw): perfectly tiled in VMEM (no lane padding).
    basis = jnp.stack([one, x, y, x * x, x * y, y * y, zero, zero], axis=0)

    cost = pl.CostEstimate(
        flops=int(2 * (2 * bn_pad * hw * 8) + bn_pad * hw),
        transcendentals=0,
        bytes_accessed=int(bn_pad * hw * itemsize + 8 * bn_pad * 4 + 8 * hw * 4),
    )

    raw = pl.pallas_call(
        _pca_kernel,
        out_shape=jax.ShapeDtypeStruct((8, bn_pad), jnp.float32),
        grid_spec=pltpu.PrefetchScalarGridSpec(
            num_scalar_prefetch=0,
            grid=(num_steps,),
            in_specs=[
                pl.BlockSpec((rt, hw), lambda i: (i, 0)),
                pl.BlockSpec((8, hw), lambda i: (0, 0)),
            ],
            out_specs=pl.BlockSpec((8, rt), lambda i: (0, i)),
        ),
        compiler_params=pltpu.CompilerParams(
            dimension_semantics=("parallel",),
            vmem_limit_bytes=int(vmem_cap * 3 // 4),
        ),
        cost_estimate=cost,
    )(hm2d, basis)

    raw = raw[:, :bn]                                   # (8, bn) tiny slab
    means = raw[0:2, :].T.reshape(b, n, 2)              # [xmean, ymean]
    covars = raw[2:6, :].T.reshape(b, n, 2, 2)          # [[cxx,cxy],[cyx,cyy]]

    # torch.symeig(eigenvectors=True): ascending eigenvalues, eigenvectors as
    # columns -> jnp.linalg.eigh matches (up to eigenvector sign).
    evalues, evectors = jnp.linalg.eigh(covars)
    return means, covars, evalues, evectors


def testtime_pca_forward(heatmap, groundtruth):
    """Reproduces TestTimePCA.forward: returns a list of dicts (one per batch)."""
    b = heatmap.shape[0]
    means, _, evalues, evectors = testtime_pca_core(heatmap)
    means, evalues, evectors = jax.block_until_ready((means, evalues, evectors))

    means_np = jax.device_get(means)
    ev_np = jax.device_get(evalues)
    evec_np = jax.device_get(evectors)
    gt_np = jax.device_get(groundtruth)

    results = [dict() for _ in range(b)]
    for i in range(b):
        results[i]['pred'] = means_np[i].tolist()
        results[i]['gt'] = gt_np[i].tolist()
        results[i]['evalues'] = ev_np[i].tolist()
        results[i]['evectors'] = evec_np[i].tolist()
    return results


def _reference_core(heatmap):
    """Pure-JAX reference (mirrors the PyTorch math) for a correctness check."""
    b, n, h, w = heatmap.shape
    hm = heatmap.astype(jnp.float32)
    s = jnp.maximum(hm.sum(axis=(2, 3)), 1e-6)
    htp = hm / s[:, :, None, None]
    yv, xv = _make_grid(h, w)
    xmean = (xv * htp).sum(axis=(2, 3))
    ymean = (yv * htp).sum(axis=(2, 3))
    dx = xv - xmean[:, :, None, None]
    dy = yv - ymean[:, :, None, None]
    cxx = (htp * dx * dx).sum(axis=(2, 3))
    cxy = (htp * dx * dy).sum(axis=(2, 3))
    cyy = (htp * dy * dy).sum(axis=(2, 3))
    v1 = htp.sum(axis=(2, 3)) + EPSILON
    v2 = (htp * htp).sum(axis=(2, 3)) + EPSILON
    denom = v1 - v2 / v1
    means = jnp.stack([xmean, ymean], axis=-1)
    cov = jnp.stack([cxx, cxy, cxy, cyy], axis=-1).reshape(b, n, 2, 2)
    cov = cov / denom[:, :, None, None]
    return means, cov


if __name__ == "__main__":
    key = jax.random.PRNGKey(0)
    k1, k2 = jax.random.split(key)

    B, N, H, W = 2, 8, 16, 16
    # non-negative heatmaps (like softmax/gaussian heatmaps)
    heatmap = jax.random.uniform(k1, (B, N, H, W), dtype=jnp.float32)
    groundtruth = jax.random.uniform(k2, (B, N, 2), dtype=jnp.float32) * 2.0 - 1.0

    means, covars, evalues, evectors = testtime_pca_core(heatmap)
    jax.block_until_ready((means, covars, evalues, evectors))

    # correctness check against the pure-JAX reference
    ref_means, ref_cov = _reference_core(heatmap)
    assert jnp.allclose(means, ref_means, atol=1e-4, rtol=1e-4)
    assert jnp.allclose(covars, ref_cov, atol=1e-4, rtol=1e-4)

    results = testtime_pca_forward(heatmap, groundtruth)

    # light sanity checks
    assert len(results) == B
    assert len(results[0]['pred']) == N
    assert len(results[0]['evalues'][0]) == 2
    assert len(results[0]['evectors'][0]) == 2

    print("KERNEL_OK")
</pallas_src>

<mosaic_0001>
module attributes {stable_mosaic.version = 11 : i64} {
  func.func @_pca_kernel(%arg0: i32, %arg1: memref<128x256xf32, #tpu.memory_space<vmem>>, %arg2: memref<8x256xf32, #tpu.memory_space<vmem>>, %arg3: memref<8x128xf32, #tpu.memory_space<vmem>>) attributes {dimension_semantics = [#tpu.dimension_semantics<parallel>], iteration_bounds = array<i64: 1>, scalar_prefetch = 0 : i64, scratch_operands = 0 : i64, tpu.core_type = #tpu.core_type<tc>, window_params = [{transform_indices = @transform_0, window_bounds = array<i64: 128, 256>}, {pipeline_mode = #tpu.pipeline_mode<synchronous>, transform_indices = @transform_1, window_bounds = array<i64: 8, 256>}, {transform_indices = @transform_2, window_bounds = array<i64: 8, 128>}]} {
    %c0 = arith.constant 0 : index
    %c0_0 = arith.constant 0 : index
    %0 = vector.load %arg1[%c0, %c0_0] : memref<128x256xf32, #tpu.memory_space<vmem>>, vector<128x256xf32>
    %c0_1 = arith.constant 0 : index
    %c0_2 = arith.constant 0 : index
    %1 = vector.load %arg2[%c0_1, %c0_2] : memref<8x256xf32, #tpu.memory_space<vmem>>, vector<8x256xf32>
    %cst = arith.constant dense<0.000000e+00> : vector<8x128xf32>
    %2 = tpu.matmul %1, %0, %cst {dimension_numbers = #tpu.dot_dimension_numbers<[1], [1], [0], [0], [0, 0, 1, 0], [], []>} : vector<8x256xf32>, vector<128x256xf32>, vector<8x128xf32> -> vector<8x128xf32>
    %c0_3 = arith.constant 0 : index
    %c0_4 = arith.constant 0 : index
    %3 = vector.load %arg2[%c0_3, %c0_4] : memref<8x256xf32, #tpu.memory_space<vmem>>, vector<8x256xf32>
    %4 = arith.mulf %0, %0 : vector<128x256xf32>
    %cst_5 = arith.constant dense<0.000000e+00> : vector<8x128xf32>
    %5 = tpu.matmul %3, %4, %cst_5 {dimension_numbers = #tpu.dot_dimension_numbers<[1], [1], [0], [0], [0, 0, 1, 0], [], []>} : vector<8x256xf32>, vector<128x256xf32>, vector<8x128xf32> -> vector<8x128xf32>
    %6 = vector.extract_strided_slice %5 {offsets = [0, 0], sizes = [1, 128], strides = [1, 1]} : vector<8x128xf32> to vector<1x128xf32>
    %7 = vector.extract_strided_slice %2 {offsets = [0, 0], sizes = [1, 128], strides = [1, 1]} : vector<8x128xf32> to vector<1x128xf32>
    %8 = vector.extract_strided_slice %2 {offsets = [1, 0], sizes = [1, 128], strides = [1, 1]} : vector<8x128xf32> to vector<1x128xf32>
    %9 = vector.extract_strided_slice %2 {offsets = [2, 0], sizes = [1, 128], strides = [1, 1]} : vector<8x128xf32> to vector<1x128xf32>
    %10 = vector.extract_strided_slice %2 {offsets = [3, 0], sizes = [1, 128], strides = [1, 1]} : vector<8x128xf32> to vector<1x128xf32>
    %11 = vector.extract_strided_slice %2 {offsets = [4, 0], sizes = [1, 128], strides = [1, 1]} : vector<8x128xf32> to vector<1x128xf32>
    %12 = vector.extract_strided_slice %2 {offsets = [5, 0], sizes = [1, 128], strides = [1, 1]} : vector<8x128xf32> to vector<1x128xf32>
    %cst_6 = arith.constant 9.99999997E-7 : f32
    %13 = vector.broadcast %cst_6 : f32 to vector<1x128xf32>
    %14 = arith.maximumf %7, %13 : vector<1x128xf32>
    %cst_7 = arith.constant 1.000000e+00 : f32
    %15 = vector.broadcast %cst_7 : f32 to vector<1x128xf32>
    %16 = arith.divf %15, %14 : vector<1x128xf32>
    %17 = arith.mulf %8, %16 : vector<1x128xf32>
    %18 = arith.mulf %9, %16 : vector<1x128xf32>
    %cst_8 = arith.constant 2.000000e+00 : f32
    %19 = vector.broadcast %cst_8 : f32 to vector<1x128xf32>
    %20 = arith.mulf %19, %17 : vector<1x128xf32>
    %21 = arith.mulf %20, %8 : vector<1x128xf32>
    %22 = arith.subf %10, %21 : vector<1x128xf32>
    %23 = arith.mulf %17, %17 : vector<1x128xf32>
    %24 = arith.mulf %23, %7 : vector<1x128xf32>
    %25 = arith.addf %22, %24 : vector<1x128xf32>
    %26 = arith.mulf %25, %16 : vector<1x128xf32>
    %27 = arith.mulf %17, %9 : vector<1x128xf32>
    %28 = arith.subf %11, %27 : vector<1x128xf32>
    %29 = arith.mulf %18, %8 : vector<1x128xf32>
    %30 = arith.subf %28, %29 : vector<1x128xf32>
    %31 = arith.mulf %17, %18 : vector<1x128xf32>
    %32 = arith.mulf %31, %7 : vector<1x128xf32>
    %33 = arith.addf %30, %32 : vector<1x128xf32>
    %34 = arith.mulf %33, %16 : vector<1x128xf32>
    %cst_9 = arith.constant 2.000000e+00 : f32
    %35 = vector.broadcast %cst_9 : f32 to vector<1x128xf32>
    %36 = arith.mulf %35, %18 : vector<1x128xf32>
    %37 = arith.mulf %36, %9 : vector<1x128xf32>
    %38 = arith.subf %12, %37 : vector<1x128xf32>
    %39 = arith.mulf %18, %18 : vector<1x128xf32>
    %40 = arith.mulf %39, %7 : vector<1x128xf32>
    %41 = arith.addf %38, %40 : vector<1x128xf32>
    %42 = arith.mulf %41, %16 : vector<1x128xf32>
    %43 = arith.mulf %7, %16 : vector<1x128xf32>
    %cst_10 = arith.constant 9.99999974E-6 : f32
    %44 = vector.broadcast %cst_10 : f32 to vector<1x128xf32>
    %45 = arith.addf %43, %44 : vector<1x128xf32>
    %46 = arith.mulf %6, %16 : vector<1x128xf32>
    %47 = arith.mulf %46, %16 : vector<1x128xf32>
    %cst_11 = arith.constant 9.99999974E-6 : f32
    %48 = vector.broadcast %cst_11 : f32 to vector<1x128xf32>
    %49 = arith.addf %47, %48 : vector<1x128xf32>
    %50 = arith.divf %49, %45 : vector<1x128xf32>
    %51 = arith.subf %45, %50 : vector<1x128xf32>
    %cst_12 = arith.constant 1.000000e+00 : f32
    %52 = vector.broadcast %cst_12 : f32 to vector<1x128xf32>
    %53 = arith.divf %52, %51 : vector<1x128xf32>
    %cst_13 = arith.constant 0.000000e+00 : f32
    %54 = vector.broadcast %cst_13 : f32 to vector<1x128xf32>
    %55 = arith.mulf %26, %53 : vector<1x128xf32>
    %56 = arith.mulf %34, %53 : vector<1x128xf32>
    %57 = arith.mulf %34, %53 : vector<1x128xf32>
    %58 = arith.mulf %42, %53 : vector<1x128xf32>
    %59 = tpu.concatenate %17, %18, %55, %56, %57, %58, %54, %54 in 0 : vector<1x128xf32>, vector<1x128xf32>, vector<1x128xf32>, vector<1x128xf32>, vector<1x128xf32>, vector<1x128xf32>, vector<1x128xf32>, vector<1x128xf32> -> vector<8x128xf32>
    %c0_14 = arith.constant 0 : index
    %c0_15 = arith.constant 0 : index
    %60 = vector.load %arg3[%c0_14, %c0_15] : memref<8x128xf32, #tpu.memory_space<vmem>>, vector<8x128xf32>
    tpu.vector_store %arg3[%c0_14, %c0_15], %59 {strides = array<i32>} : memref<8x128xf32, #tpu.memory_space<vmem>>, vector<8x128xf32>,
    return
  }
  func.func @transform_0(%arg0: i32) -> (i32, i32) {
    %c0_i32 = arith.constant 0 : i32
    %c0_i32_0 = arith.constant 0 : i32
    return %arg0, %c0_i32 : i32, i32
  }
  func.func @transform_1(%arg0: i32) -> (i32, i32) {
    %c0_i32 = arith.constant 0 : i32
    %c0_i32_0 = arith.constant 0 : i32
    %c0_i32_1 = arith.constant 0 : i32
    return %c0_i32, %c0_i32_0 : i32, i32
  }
  func.func @transform_2(%arg0: i32) -> (i32, i32) {
    %c0_i32 = arith.constant 0 : i32
    %c0_i32_0 = arith.constant 0 : i32
    return %c0_i32, %arg0 : i32, i32
  }
}

</mosaic_0001>

<bundles_post_ra>
// kernel: testtime_pca_core.1
= control target key start
LH: loop header
LB: loop body
LE: loop exit
PB: predicated region body
PF: predicated region fallthrough
CT: control target
= control target key end

     0   :  { %vm315_vm0 = vcmask 1040384   ;;  %vm317_vm1 = vcmask 1041408   ;;  %vm319_vm2 = vcmask 1042432   ;;  %vm321_vm3 = vcmask 1043456   ;;  %s470_s0 = inlined_call_operand.vmem [shape: f32[128,256], index: 0, kind: input, shape index: {}]   ;;  %s471_s1 = inlined_call_operand.vmem [shape: f32[8,256], index: 1, kind: input, shape index: {}]   ;;  %s472_s2 = inlined_call_operand.vmem [shape: f32[8,128], index: 2, kind: output, shape index: {}]  }
   0x1   :  { %v42_v0 = vld [vmem:[%s470_s0 + $0xf8] sm:$0xff]  ;;  %v41_v1 = vld [vmem:[%s470_s0 + $0xf0] sm:$0xff]  ;;  %v40_v2 = vld [vmem:[%s470_s0 + $0xe8] sm:$0xff]  ;;  %vm323_vm4 = vcmask 1044480   ;;  %vm325_vm5 = vcmask 1045504   ;;  %vm327_vm6 = vcmask 1046528  }
   0x2   :  { %45 = vmatprep.subr.mxu0 %v42_v0  ;;  %v144_v3 = vmul.f32 %v40_v2, %v40_v2  ;;  %v146_v4 = vmul.f32 %v42_v0, %v42_v0  ;;  %v145_v5 = vmul.f32 %v41_v1, %v41_v1  ;;  %v39_v6 = vld [vmem:[%s470_s0 + $0xe0] sm:$0xff]  ;;  %v38_v8 = vld [vmem:[%s470_s0 + $0xd8] sm:$0xff]  ;;  %v37_v10 = vld [vmem:[%s470_s0 + $0xd0] sm:$0xff] }
   0x3   :  { %46 = vmatpush1.xpose.msra.mxu0 %v41_v1  ;;  %v143_v7 = vmul.f32 %v39_v6, %v39_v6  ;;  %v142_v9 = vmul.f32 %v38_v8, %v38_v8  ;;  %v141_v11 = vmul.f32 %v37_v10, %v37_v10  ;;  %v36_v12 = vld [vmem:[%s470_s0 + $0xc8] sm:$0xff]  ;;  %v35_v15 = vld [vmem:[%s470_s0 + $0xc0] sm:$0xff]  ;;  %v34_v17 = vld [vmem:[%s470_s0 + $0xb8] sm:$0xff] }
   0x4   :  { %47 = vmatprep.subr.mxu0 %v40_v2  ;;  %147 = vmatprep.subr.mxu1 %v146_v4  ;;  %v140_v13 = vmul.f32 %v36_v12, %v36_v12  ;;  %v44_v14 = vld [vmem:[%s471_s1 + $0x8] sm:$0xff]  ;;  %v139_v16 = vmul.f32 %v35_v15, %v35_v15  ;;  %v138_v18 = vmul.f32 %v34_v17, %v34_v17  ;;  %v33_v19 = vld [vmem:[%s470_s0 + $0xb0] sm:$0xff]  ;;  %v31_v23 = vld [vmem:[%s470_s0 + $0xa0] sm:$0xff] }
   0x5   :  { %148 = vmatpush1.xpose.msra.mxu1 %v145_v5  ;;  %109 = vmatprep.mubr.f32.mxu0 %v44_v14  ;;  %v137_v20 = vmul.f32 %v33_v19, %v33_v19  ;;  %v32_v21 = vld [vmem:[%s470_s0 + $0xa8] sm:$0xff]  ;;  %v135_v24 = vmul.f32 %v31_v23, %v31_v23  ;;  %v30_v25 = vld [vmem:[%s470_s0 + $0x98] sm:$0xff]  ;;  %v29_v27 = vld [vmem:[%s470_s0 + $0x90] sm:$0xff] }
   0x6   :  { %149 = vmatprep.subr.mxu1 %v144_v3  ;;  %211 = vmatprep.mubr.f32.mxu1 %v44_v14  ;;  %v136_v22 = vmul.f32 %v32_v21, %v32_v21  ;;  %v134_v26 = vmul.f32 %v30_v25, %v30_v25  ;;  %v133_v28 = vmul.f32 %v29_v27, %v29_v27  ;;  %v28_v29 = vld [vmem:[%s470_s0 + $0x88] sm:$0xff]  ;;  %v27_v31 = vld [vmem:[%s470_s0 + $0x80] sm:$0xff]  ;;  %v26_v33 = vld [vmem:[%s470_s0 + $0x78] sm:$0xff] }
   0x7   :  { %48 = vmatpush1.xpose.msra.mxu0 %v39_v6  ;;  %v132_v30 = vmul.f32 %v28_v29, %v28_v29  ;;  %v131_v32 = vmul.f32 %v27_v31, %v27_v31  ;;  %v130_v34 = vmul.f32 %v26_v33, %v26_v33  ;;  %v25_v35 = vld [vmem:[%s470_s0 + $0x70] sm:$0xff]  ;;  %v24_v37 = vld [vmem:[%s470_s0 + $0x68] sm:$0xff]  ;;  %v23_v39 = vld [vmem:[%s470_s0 + $0x60] sm:$0xff] }
   0x8   :  { %49 = vmatprep.subr.mxu0 %v38_v8  ;;  %v129_v36 = vmul.f32 %v25_v35, %v25_v35  ;;  %v128_v38 = vmul.f32 %v24_v37, %v24_v37  ;;  %v127_v40 = vmul.f32 %v23_v39, %v23_v39  ;;  %v22_v41 = vld [vmem:[%s470_s0 + $0x58] sm:$0xff]  ;;  %v21_v43 = vld [vmem:[%s470_s0 + $0x50] sm:$0xff]  ;;  %v20_v45 = vld [vmem:[%s470_s0 + $0x48] sm:$0xff] }
   0x9   :  { %150 = vmatpush1.xpose.msra.mxu1 %v143_v7  ;;  %v126_v42 = vmul.f32 %v22_v41, %v22_v41  ;;  %v125_v44 = vmul.f32 %v21_v43, %v21_v43  ;;  %v124_v46 = vmul.f32 %v20_v45, %v20_v45  ;;  %v19_v47 = vld [vmem:[%s470_s0 + $0x40] sm:$0xff]  ;;  %v18_v49 = vld [vmem:[%s470_s0 + $0x38] sm:$0xff]  ;;  %v17_v51 = vld [vmem:[%s470_s0 + $0x30] sm:$0xff] }
   0xa   :  { %151 = vmatprep.subr.mxu1 %v142_v9  ;;  %v123_v48 = vmul.f32 %v19_v47, %v19_v47  ;;  %v122_v50 = vmul.f32 %v18_v49, %v18_v49  ;;  %v121_v52 = vmul.f32 %v17_v51, %v17_v51  ;;  %v16_v53 = vld [vmem:[%s470_s0 + $0x28] sm:$0xff]  ;;  %v15_v55 = vld [vmem:[%s470_s0 + $0x20] sm:$0xff]  ;;  %v14_v57 = vld [vmem:[%s470_s0 + $0x18] sm:$0xff] }
   0xb   :  { %50 = vmatpush1.xpose.msra.mxu0 %v37_v10  ;;  %v120_v54 = vmul.f32 %v16_v53, %v16_v53  ;;  %v119_v56 = vmul.f32 %v15_v55, %v15_v55  ;;  %v118_v58 = vmul.f32 %v14_v57, %v14_v57  ;;  %v13_v59 = vld [vmem:[%s470_s0 + $0x10] sm:$0xff]  ;;  %v12_v61 = vld [vmem:[%s470_s0 + $0x8] sm:$0xff]  ;;  %v11_v63 = vld [vmem:[%s470_s0] sm:$0xff] }
   0xc   :  { %51 = vmatprep.subr.mxu0 %v36_v12  ;;  %v117_v60 = vmul.f32 %v13_v59, %v13_v59  ;;  %v116_v62 = vmul.f32 %v12_v61, %v12_v61  ;;  %v115_v0 = vmul.f32 %v11_v63, %v11_v63  ;;  %v43_v1 = vld [vmem:[%s471_s1] sm:$0xff] }
   0xd   :  { %152 = vmatpush1.xpose.msra.mxu1 %v141_v11 }
   0xe   :  { %153 = vmatprep.subr.mxu1 %v140_v13 }
   0xf   :  { %52 = vmatpush1.xpose.msra.mxu0 %v35_v15 }
  0x10   :  { %53 = vmatprep.subr.mxu0 %v34_v17 }
  0x11   :  { %154 = vmatpush1.xpose.msra.mxu1 %v139_v16 }
  0x12   :  { %155 = vmatprep.subr.mxu1 %v138_v18 }
  0x13   :  { %54 = vmatpush1.xpose.msra.mxu0 %v33_v19 }
  0x14   :  { %55 = vmatprep.subr.mxu0 %v32_v21 }
  0x15   :  { %156 = vmatpush1.xpose.msra.mxu1 %v137_v20 }
  0x16   :  { %157 = vmatprep.subr.mxu1 %v136_v22 }
  0x17   :  { %56 = vmatpush1.xpose.msra.mxu0 %v31_v23 }
  0x18   :  { %57 = vmatprep.subr.mxu0 %v30_v25 }
  0x19   :  { %158 = vmatpush1.xpose.msra.mxu1 %v135_v24 }
  0x1a   :  { %159 = vmatprep.subr.mxu1 %v134_v26 }
  0x1b   :  { %58 = vmatpush1.xpose.msra.mxu0 %v29_v27 }
  0x1c   :  { %59 = vmatprep.subr.mxu0 %v28_v29 }
  0x1d   :  { %160 = vmatpush1.xpose.msra.mxu1 %v133_v28 }
  0x1e   :  { %161 = vmatprep.subr.mxu1 %v132_v30 }
  0x1f   :  { %60 = vmatpush1.xpose.msra.mxu0 %v27_v31 }
  0x20   :  { %61 = vmatprep.subr.mxu0 %v26_v33 }
  0x21   :  { %162 = vmatpush1.xpose.msra.mxu1 %v131_v32 }
  0x22   :  { %163 = vmatprep.subr.mxu1 %v130_v34 }
  0x23   :  { %62 = vmatpush1.xpose.msra.mxu0 %v25_v35 }
  0x24   :  { %63 = vmatprep.subr.mxu0 %v24_v37 }
  0x25   :  { %164 = vmatpush1.xpose.msra.mxu1 %v129_v36 }
  0x26   :  { %165 = vmatprep.subr.mxu1 %v128_v38 }
  0x27   :  { %64 = vmatpush1.xpose.msra.mxu0 %v23_v39 }
  0x28   :  { %65 = vmatprep.subr.mxu0 %v22_v41 }
  0x29   :  { %166 = vmatpush1.xpose.msra.mxu1 %v127_v40 }
  0x2a   :  { %167 = vmatprep.subr.mxu1 %v126_v42 }
  0x2b   :  { %66 = vmatpush1.xpose.msra.mxu0 %v21_v43 }
  0x2c   :  { %67 = vmatprep.subr.mxu0 %v20_v45 }
  0x2d   :  { %168 = vmatpush1.xpose.msra.mxu1 %v125_v44 }
  0x2e   :  { %169 = vmatprep.subr.mxu1 %v124_v46 }
  0x2f   :  { %68 = vmatpush1.xpose.msra.mxu0 %v19_v47 }
  0x30   :  { %69 = vmatprep.subr.mxu0 %v18_v49 }
  0x31   :  { %170 = vmatpush1.xpose.msra.mxu1 %v123_v48 }
  0x32   :  { %171 = vmatprep.subr.mxu1 %v122_v50 }
  0x33   :  { %70 = vmatpush1.xpose.msra.mxu0 %v17_v51 }
  0x34   :  { %71 = vmatprep.subr.mxu0 %v16_v53 }
  0x35   :  { %172 = vmatpush1.xpose.msra.mxu1 %v121_v52 }
  0x36   :  { %173 = vmatprep.subr.mxu1 %v120_v54 }
  0x37   :  { %72 = vmatpush1.xpose.msra.mxu0 %v15_v55 }
  0x38   :  { %73 = vmatprep.subr.mxu0 %v14_v57 }
  0x39   :  { %174 = vmatpush1.xpose.msra.mxu1 %v119_v56 }
  0x3a   :  { %175 = vmatprep.subr.mxu1 %v118_v58 }
  0x3b   :  { %74 = vmatpush1.xpose.msra.mxu0 %v13_v59 }
  0x3c   :  { %75 = vmatprep.subr.mxu0 %v12_v61 }
  0x3d   :  { %176 = vmatpush1.xpose.msra.mxu1 %v117_v60 }
  0x3e   :  { %177 = vmatprep.subr.mxu1 %v116_v62 }
  0x3f   :  { %76 = vmatpush1.xpose.msra.mxu0 %v11_v63 }
  0x41   :  { %178 = vmatpush1.xpose.msra.mxu1 %v115_v0 }
  0x42   :  { %110 = vmatmul.mubr.f32.vlgmr.msra.gmra.mxu0 %v43_v1 }
  0x44   :  { %212 = vmatmul.mubr.f32.vlgmr.msra.gmra.mxu1 %v43_v1 }
 0x102   :  { %v111_v2 = vpop.f32.mrf.mxu0 }
 0x103   :  { %v217_v3 = vmax.f32 %v111_v2, 1e-06  ;;  %v245_v16 = vrot.slane %v111_v2, 1  ;;  %v235_v23 = vrot.slane %v111_v2, 7  ;;  %v276_v42 = vrot.slane %v111_v2, 6 }
 0x104   :  { %v113_v4 = vpop.f32.mrf.mxu0  ;;  %v213_v5 = vpop.f32.mrf.mxu1 }
 0x105   :  { %334 = vrcp.f32 %v217_v3 }
 0x106   :  { %v215_v6 = vpop.f32.mrf.mxu1 }
 0x112   :  { %v457_v7 = vpop.eup %334 }
 0x113   :  { %v286_v8 = vmul.f32 %v457_v7, %v111_v2  ;;  %v221_v10 = vrot.slane %v457_v7, 7  ;;  %v224_v11 = vrot.slane %v457_v7, 6  ;;  %v288_v12 = vmul.f32 %v457_v7, %v213_v5 }
 0x114   :  { %v242_v48 = vrot.slane %v457_v7, 5  ;;  %v266_v49 = vrot.slane %v457_v7, 4  ;;  %v283_v60 = vrot.slane %v457_v7, 3 }
 0x115   :  { %v287_v9 = vadd.f32 1e-05, %v286_v8  ;;  %v223_v13 = vmul.f32 %v221_v10, %v111_v2  ;;  %v226_v14 = vmul.f32 %v224_v11, %v111_v2  ;;  %v289_v15 = vmul.f32 %v457_v7, %v288_v12 }
 0x117   :  { %336 = vrcp.f32 %v287_v9  ;;  %v227_v17 = vmul.f32 2.0, %v223_v13  ;;  %v247_v18 = vmul.f32 %v245_v16, %v223_v13  ;;  %v258_v19 = vrot.slane %v226_v14, 1 }
 0x118   :  { %v290_v20 = vadd.f32 1e-05, %v289_v15  ;;  %v269_v28 = vmul.f32 2.0, %v226_v14  ;;  %v233_v29 = vmul.f32 %v223_v13, %v223_v13  ;;  %v252_v30 = vmul.f32 %v235_v23, %v226_v14 }
 0x119   :  { %v228_v24 = vmul.f32 %v227_v17, %v111_v2  ;;  %v249_v25 = vrot.slane %v247_v18, 5  ;;  %v260_v26 = vmul.f32 %v258_v19, %v223_v13  ;;  %v275_v37 = vmul.f32 %v226_v14, %v226_v14 }
 0x11a   :  { %v270_v34 = vmul.f32 %v269_v28, %v111_v2  ;;  %v237_v35 = vmul.f32 %v235_v23, %v233_v29  ;;  %v254_v36 = vrot.slane %v252_v30, 6  ;;  %v307_v57 = vrot.slane %v223_v13, 1 }
 0x11b   :  { %v230_v31 = vrot.slane %v228_v24, 6  ;;  %v251_v32 = vsub.f32 %v111_v2, %v249_v25  ;;  %v261_v33 = vmul.f32 %v260_v26, %v235_v23  ;;  %v278_v44 = vmul.f32 %v276_v42, %v275_v37 }
 0x11c   :  { %v272_v41 = vrot.slane %v270_v34, 5  ;;  %v239_v43 = vrot.slane %v237_v35, 6  ;;  %v316_v1 = vsel %vm315_vm0, %v307_v57, %v258_v19 }
 0x11d   :  { %v232_v38 = vsub.f32 %v111_v2, %v230_v31  ;;  %v256_v39 = vsub.f32 %v251_v32, %v254_v36  ;;  %v263_v40 = vrot.slane %v261_v33, 5  ;;  %v280_v51 = vrot.slane %v278_v44, 5 }
 0x11e   :  { %v274_v47 = vsub.f32 %v111_v2, %v272_v41 }
 0x11f   :  { %v241_v45 = vadd.f32 %v239_v43, %v232_v38  ;;  %v265_v46 = vadd.f32 %v263_v40, %v256_v39 }
 0x120   :  { %v282_v56 = vadd.f32 %v280_v51, %v274_v47 }
 0x121   :  { %v244_v52 = vmul.f32 %v242_v48, %v241_v45  ;;  %v268_v53 = vmul.f32 %v266_v49, %v265_v46 }
 0x122   :  { %v285_v0 = vmul.f32 %v283_v60, %v282_v56 }
 0x124   :  { %v337_v21 = vpop.eup %336 }
 0x125   :  { %v292_v22 = vmul.f32 %v337_v21, %v290_v20 }
 0x127   :  { %v293_v27 = vsub.f32 %v287_v9, %v292_v22 }
 0x129   :  { %338 = vrcp.f32 %v293_v27 }
 0x136   :  { %v339_v50 = vpop.eup %338 }
 0x137   :  { %v297_v54 = vrot.slane %v339_v50, 5  ;;  %v300_v55 = vrot.slane %v339_v50, 4  ;;  %v303_v61 = vrot.slane %v339_v50, 3 }
 0x139   :  { %v299_v58 = vmul.f32 %v297_v54, %v244_v52  ;;  %v302_v59 = vmul.f32 %v300_v55, %v268_v53  ;;  %v305_v3 = vmul.f32 %v303_v61, %v285_v0 }
 0x13b   :  { %v310_v62 = vrot.slane %v299_v58, 1  ;;  %v313_v63 = vrot.slane %v302_v59, 1 }
 0x13d   :  { %v318_v2 = vsel %vm317_vm1, %v316_v1, %v310_v62 }
 0x13e   :  { %v320_v4 = vsel %vm319_vm2, %v318_v2, %v313_v63 }
 0x13f   :  { %v322_v5 = vsel %vm321_vm3, %v320_v4, %v302_v59 }
 0x140   :  { %v324_v6 = vsel %vm323_vm4, %v322_v5, %v305_v3 }
 0x141   :  { %v326_v8 = vsel %vm325_vm5, %v324_v6, 0.0 }
 0x142   :  { %v328_v9 = vsel %vm327_vm6, %v326_v8, 0.0 }
 0x143   :  { %329 = vst [vmem:[%s472_s2] sm:$0xff] %v328_v9 }

</bundles_post_ra>
